<compile_context>
chip_gen: v6e
topology: v6e:2x2x1
jax: 0.10.0
libtpu: 0.0.40
codegen_flags: <defaults>
</compile_context>

<pallas_src>
import functools

import jax
import jax.numpy as jnp
from jax.experimental import pallas as pl
from jax.experimental.pallas import tpu as pltpu


def _mlp_kernel(x_ref,
                w0_ref, b0_ref,
                w1_ref, b1_ref,
                w2_ref, b2_ref,
                w3_ref, b3_ref,
                o_ref):
    """Transposed 4-layer MLP for one batch tile. Activations: (features, bt)."""
    h = x_ref[...]                                                   # (D, bt)

    h = jnp.dot(w0_ref[...], h, preferred_element_type=jnp.float32) + b0_ref[...]
    h = jnp.maximum(h, 0.0).astype(w1_ref.dtype)                     # (N, bt)

    h = jnp.dot(w1_ref[...], h, preferred_element_type=jnp.float32) + b1_ref[...]
    h = jnp.maximum(h, 0.0).astype(w2_ref.dtype)

    h = jnp.dot(w2_ref[...], h, preferred_element_type=jnp.float32) + b2_ref[...]
    h = jnp.maximum(h, 0.0).astype(w3_ref.dtype)

    out = jnp.dot(w3_ref[...], h, preferred_element_type=jnp.float32) + b3_ref[...]
    o_ref[...] = out.astype(o_ref.dtype)                             # (1, bt) lane-dense


def _round_up(x, m):
    return ((x + m - 1) // m) * m


@functools.partial(jax.jit, static_argnames=("batch_tile", "compute_dtype"))
def discriminator_forward(x, params, *, batch_tile=512, compute_dtype=jnp.float32):
    """x: (B, data_dim) float32.  Returns (B,) float32 (matches output.view(-1)).

    params: list of (W, b) in PyTorch layout, W: (out_features, in_features).
    """
    B, data_dim = x.shape
    (w0, b0), (w1, b1), (w2, b2), (w3, b3) = params

    # Batch lives on lanes -> tiles are multiples of 128.  For small B use one
    # padded tile; for large B use `batch_tile` rows per grid step so the grid
    # has >= 2 parallel steps (v7x megacore) and the MXU M dim is well filled.
    tile = max(128, min(int(batch_tile), _round_up(B, 128)))
    tile = _round_up(tile, 128)
    B_pad = _round_up(B, tile)
    num_tiles = B_pad // tile

    # (B, D) -> (D, B_pad): features on sublanes, batch on lanes.
    x_p = jnp.pad(x, ((0, B_pad - B), (0, 0)))
    x_t = x_p.T.astype(compute_dtype)

    # Weights in compute dtype; biases kept f32 as (out_features, 1) columns so
    # they broadcast across the lane (batch) axis after the f32 matmul.
    w0c = w0.astype(compute_dtype)
    w1c = w1.astype(compute_dtype)
    w2c = w2.astype(compute_dtype)
    w3c = w3.astype(compute_dtype)
    b0c = b0.reshape(-1, 1).astype(jnp.float32)
    b1c = b1.reshape(-1, 1).astype(jnp.float32)
    b2c = b2.reshape(-1, 1).astype(jnp.float32)
    b3c = b3.reshape(-1, 1).astype(jnp.float32)

    def resident(arr):
        shp = arr.shape
        return pl.BlockSpec(shp, lambda i, _s=shp: (0,) * len(_s))

    out2d = pl.pallas_call(
        _mlp_kernel,
        out_shape=jax.ShapeDtypeStruct((1, B_pad), jnp.float32),
        grid_spec=pltpu.PrefetchScalarGridSpec(
            num_scalar_prefetch=0,
            grid=(num_tiles,),
            in_specs=[
                pl.BlockSpec((data_dim, tile), lambda i: (0, i)),   # x tile
                resident(w0c), resident(b0c),
                resident(w1c), resident(b1c),
                resident(w2c), resident(b2c),
                resident(w3c), resident(b3c),
            ],
            out_specs=pl.BlockSpec((1, tile), lambda i: (0, i)),    # lane-dense output
        ),
        compiler_params=pltpu.CompilerParams(
            dimension_semantics=("parallel",),
        ),
    )(x_t, w0c, b0c, w1c, b1c, w2c, b2c, w3c, b3c)

    return out2d[0, :B]    # output.view(-1), padding rows dropped


def init_discriminator_params(key, n_neurons=64, data_dim=32):
    """torch.nn.Linear-style init, weights in PyTorch (out_features, in_features) layout."""
    dims = [(n_neurons, data_dim),
            (n_neurons, n_neurons),
            (n_neurons, n_neurons),
            (1, n_neurons)]
    params = []
    for (fan_out, fan_in) in dims:
        key, kw, kb = jax.random.split(key, 3)
        bound = 1.0 / (fan_in ** 0.5)
        w = jax.random.uniform(kw, (fan_out, fan_in), jnp.float32, -bound, bound)
        b = jax.random.uniform(kb, (fan_out,), jnp.float32, -bound, bound)
        params.append((w, b))
    return params


def _reference_forward(x, params):
    h = x
    for i, (w, b) in enumerate(params):
        h = h @ w.T + b
        if i < len(params) - 1:
            h = jnp.maximum(h, 0.0)
    return h.reshape(-1)


if __name__ == "__main__":
    key = jax.random.PRNGKey(0)
    k_params, k_x = jax.random.split(key)

    n_neurons, data_dim, batch = 64, 32, 16
    params = init_discriminator_params(k_params, n_neurons=n_neurons, data_dim=data_dim)
    x = jax.random.normal(k_x, (batch, data_dim), jnp.float32)

    # Small-batch path (single padded 128-lane tile, grid of 1).
    out = jax.block_until_ready(discriminator_forward(x, params))
    ref = _reference_forward(x, params)
    assert out.shape == (batch,)
    assert jnp.allclose(out, ref, atol=1e-5, rtol=1e-5)

    # Ragged batch + multi-step grid path (exercises padding and tiling).
    x2 = jax.random.normal(jax.random.PRNGKey(1), (300, data_dim), jnp.float32)
    out2 = jax.block_until_ready(discriminator_forward(x2, params, batch_tile=128))
    ref2 = _reference_forward(x2, params)
    assert out2.shape == (300,)
    assert jnp.allclose(out2, ref2, atol=1e-5, rtol=1e-5)

    # bf16 fast path (halves HBM traffic on x), f32 accumulation, looser tolerance.
    out_bf16 = jax.block_until_ready(
        discriminator_forward(x, params, compute_dtype=jnp.bfloat16))
    assert jnp.allclose(out_bf16, ref, atol=5e-2, rtol=5e-2)

    print("KERNEL_OK")
</pallas_src>

<mosaic_0001>
module attributes {stable_mosaic.version = 11 : i64} {
  func.func @_mlp_kernel(%arg0: i32, %arg1: memref<32x128xf32, #tpu.memory_space<vmem>>, %arg2: memref<64x32xf32, #tpu.memory_space<vmem>>, %arg3: memref<64x1xf32, #tpu.memory_space<vmem>>, %arg4: memref<64x64xf32, #tpu.memory_space<vmem>>, %arg5: memref<64x1xf32, #tpu.memory_space<vmem>>, %arg6: memref<64x64xf32, #tpu.memory_space<vmem>>, %arg7: memref<64x1xf32, #tpu.memory_space<vmem>>, %arg8: memref<1x64xf32, #tpu.memory_space<vmem>>, %arg9: memref<1x1xf32, #tpu.memory_space<vmem>>, %arg10: memref<1x128xf32, #tpu.memory_space<vmem>>) attributes {dimension_semantics = [#tpu.dimension_semantics<parallel>], iteration_bounds = array<i64: 1>, scalar_prefetch = 0 : i64, scratch_operands = 0 : i64, tpu.core_type = #tpu.core_type<tc>, window_params = [{transform_indices = @transform_0, window_bounds = array<i64: 32, 128>}, {pipeline_mode = #tpu.pipeline_mode<synchronous>, transform_indices = @transform_1, window_bounds = array<i64: 64, 32>}, {pipeline_mode = #tpu.pipeline_mode<synchronous>, transform_indices = @transform_2, window_bounds = array<i64: 64, 1>}, {pipeline_mode = #tpu.pipeline_mode<synchronous>, transform_indices = @transform_3, window_bounds = array<i64: 64, 64>}, {pipeline_mode = #tpu.pipeline_mode<synchronous>, transform_indices = @transform_4, window_bounds = array<i64: 64, 1>}, {pipeline_mode = #tpu.pipeline_mode<synchronous>, transform_indices = @transform_5, window_bounds = array<i64: 64, 64>}, {pipeline_mode = #tpu.pipeline_mode<synchronous>, transform_indices = @transform_6, window_bounds = array<i64: 64, 1>}, {pipeline_mode = #tpu.pipeline_mode<synchronous>, transform_indices = @transform_7, window_bounds = array<i64: 1, 64>}, {pipeline_mode = #tpu.pipeline_mode<synchronous>, transform_indices = @transform_8, window_bounds = array<i64: 1, 1>}, {transform_indices = @transform_9, window_bounds = array<i64: 1, 128>}]} {
    %c0 = arith.constant 0 : index
    %c0_0 = arith.constant 0 : index
    %0 = vector.load %arg1[%c0, %c0_0] : memref<32x128xf32, #tpu.memory_space<vmem>>, vector<32x128xf32>
    %c0_1 = arith.constant 0 : index
    %c0_2 = arith.constant 0 : index
    %1 = vector.load %arg2[%c0_1, %c0_2] : memref<64x32xf32, #tpu.memory_space<vmem>>, vector<64x32xf32>
    %cst = arith.constant dense<0.000000e+00> : vector<64x128xf32>
    %2 = tpu.matmul %1, %0, %cst {dimension_numbers = #tpu.dot_dimension_numbers<[1], [0], [0], [1], [0, 0, 1, 1], [], []>} : vector<64x32xf32>, vector<32x128xf32>, vector<64x128xf32> -> vector<64x128xf32>
    %c0_3 = arith.constant 0 : index
    %c0_4 = arith.constant 0 : index
    %3 = vector.load %arg3[%c0_3, %c0_4] : memref<64x1xf32, #tpu.memory_space<vmem>>, vector<64x1xf32>
    %4 = vector.broadcast %3 : vector<64x1xf32> to vector<64x128xf32>
    %5 = arith.addf %2, %4 : vector<64x128xf32>
    %cst_5 = arith.constant 0.000000e+00 : f32
    %6 = vector.broadcast %cst_5 : f32 to vector<64x128xf32>
    %7 = arith.maximumf %5, %6 : vector<64x128xf32>
    %c0_6 = arith.constant 0 : index
    %c0_7 = arith.constant 0 : index
    %8 = vector.load %arg4[%c0_6, %c0_7] : memref<64x64xf32, #tpu.memory_space<vmem>>, vector<64x64xf32>
    %cst_8 = arith.constant dense<0.000000e+00> : vector<64x128xf32>
    %9 = tpu.matmul %8, %7, %cst_8 {dimension_numbers = #tpu.dot_dimension_numbers<[1], [0], [0], [1], [0, 0, 1, 1], [], []>} : vector<64x64xf32>, vector<64x128xf32>, vector<64x128xf32> -> vector<64x128xf32>
    %c0_9 = arith.constant 0 : index
    %c0_10 = arith.constant 0 : index
    %10 = vector.load %arg5[%c0_9, %c0_10] : memref<64x1xf32, #tpu.memory_space<vmem>>, vector<64x1xf32>
    %11 = vector.broadcast %10 : vector<64x1xf32> to vector<64x128xf32>
    %12 = arith.addf %9, %11 : vector<64x128xf32>
    %cst_11 = arith.constant 0.000000e+00 : f32
    %13 = vector.broadcast %cst_11 : f32 to vector<64x128xf32>
    %14 = arith.maximumf %12, %13 : vector<64x128xf32>
    %c0_12 = arith.constant 0 : index
    %c0_13 = arith.constant 0 : index
    %15 = vector.load %arg6[%c0_12, %c0_13] : memref<64x64xf32, #tpu.memory_space<vmem>>, vector<64x64xf32>
    %cst_14 = arith.constant dense<0.000000e+00> : vector<64x128xf32>
    %16 = tpu.matmul %15, %14, %cst_14 {dimension_numbers = #tpu.dot_dimension_numbers<[1], [0], [0], [1], [0, 0, 1, 1], [], []>} : vector<64x64xf32>, vector<64x128xf32>, vector<64x128xf32> -> vector<64x128xf32>
    %c0_15 = arith.constant 0 : index
    %c0_16 = arith.constant 0 : index
    %17 = vector.load %arg7[%c0_15, %c0_16] : memref<64x1xf32, #tpu.memory_space<vmem>>, vector<64x1xf32>
    %18 = vector.broadcast %17 : vector<64x1xf32> to vector<64x128xf32>
    %19 = arith.addf %16, %18 : vector<64x128xf32>
    %cst_17 = arith.constant 0.000000e+00 : f32
    %20 = vector.broadcast %cst_17 : f32 to vector<64x128xf32>
    %21 = arith.maximumf %19, %20 : vector<64x128xf32>
    %c0_18 = arith.constant 0 : index
    %c0_19 = arith.constant 0 : index
    %22 = vector.load %arg8[%c0_18, %c0_19] : memref<1x64xf32, #tpu.memory_space<vmem>>, vector<1x64xf32>
    %cst_20 = arith.constant dense<0.000000e+00> : vector<1x128xf32>
    %23 = tpu.matmul %22, %21, %cst_20 {dimension_numbers = #tpu.dot_dimension_numbers<[1], [0], [0], [1], [0, 0, 1, 1], [], []>} : vector<1x64xf32>, vector<64x128xf32>, vector<1x128xf32> -> vector<1x128xf32>
    %c0_21 = arith.constant 0 : index
    %c0_22 = arith.constant 0 : index
    %24 = vector.load %arg9[%c0_21, %c0_22] : memref<1x1xf32, #tpu.memory_space<vmem>>, vector<1x1xf32>
    %25 = vector.broadcast %24 : vector<1x1xf32> to vector<1x128xf32>
    %26 = arith.addf %23, %25 : vector<1x128xf32>
    %c0_23 = arith.constant 0 : index
    %c0_24 = arith.constant 0 : index
    %27 = vector.load %arg10[%c0_23, %c0_24] : memref<1x128xf32, #tpu.memory_space<vmem>>, vector<1x128xf32>
    tpu.vector_store %arg10[%c0_23, %c0_24], %26 {strides = array<i32>} : memref<1x128xf32, #tpu.memory_space<vmem>>, vector<1x128xf32>,
    return
  }
  func.func @transform_0(%arg0: i32) -> (i32, i32) {
    %c0_i32 = arith.constant 0 : i32
    %c0_i32_0 = arith.constant 0 : i32
    return %c0_i32, %arg0 : i32, i32
  }
  func.func @transform_1(%arg0: i32) -> (i32, i32) {
    %c0_i32 = arith.constant 0 : i32
    %c0_i32_0 = arith.constant 0 : i32
    %c0_i32_1 = arith.constant 0 : i32
    return %c0_i32, %c0_i32_0 : i32, i32
  }
  func.func @transform_2(%arg0: i32) -> (i32, i32) {
    %c0_i32 = arith.constant 0 : i32
    %c0_i32_0 = arith.constant 0 : i32
    %c0_i32_1 = arith.constant 0 : i32
    return %c0_i32, %c0_i32_0 : i32, i32
  }
  func.func @transform_3(%arg0: i32) -> (i32, i32) {
    %c0_i32 = arith.constant 0 : i32
    %c0_i32_0 = arith.constant 0 : i32
    %c0_i32_1 = arith.constant 0 : i32
    return %c0_i32, %c0_i32_0 : i32, i32
  }
  func.func @transform_4(%arg0: i32) -> (i32, i32) {
    %c0_i32 = arith.constant 0 : i32
    %c0_i32_0 = arith.constant 0 : i32
    %c0_i32_1 = arith.constant 0 : i32
    return %c0_i32, %c0_i32_0 : i32, i32
  }
  func.func @transform_5(%arg0: i32) -> (i32, i32) {
    %c0_i32 = arith.constant 0 : i32
    %c0_i32_0 = arith.constant 0 : i32
    %c0_i32_1 = arith.constant 0 : i32
    return %c0_i32, %c0_i32_0 : i32, i32
  }
  func.func @transform_6(%arg0: i32) -> (i32, i32) {
    %c0_i32 = arith.constant 0 : i32
    %c0_i32_0 = arith.constant 0 : i32
    %c0_i32_1 = arith.constant 0 : i32
    return %c0_i32, %c0_i32_0 : i32, i32
  }
  func.func @transform_7(%arg0: i32) -> (i32, i32) {
    %c0_i32 = arith.constant 0 : i32
    %c0_i32_0 = arith.constant 0 : i32
    %c0_i32_1 = arith.constant 0 : i32
    return %c0_i32, %c0_i32_0 : i32, i32
  }
  func.func @transform_8(%arg0: i32) -> (i32, i32) {
    %c0_i32 = arith.constant 0 : i32
    %c0_i32_0 = arith.constant 0 : i32
    %c0_i32_1 = arith.constant 0 : i32
    return %c0_i32, %c0_i32_0 : i32, i32
  }
  func.func @transform_9(%arg0: i32) -> (i32, i32) {
    %c0_i32 = arith.constant 0 : i32
    %c0_i32_0 = arith.constant 0 : i32
    return %c0_i32, %arg0 : i32, i32
  }
}

</mosaic_0001>

<bundles_post_ra>
// kernel: discriminator_forward.1
= control target key start
LH: loop header
LB: loop body
LE: loop exit
PB: predicated region body
PF: predicated region fallthrough
CT: control target
= control target key end

     0   :  { %vm94_vm0 = vcmask 261120   ;;  %v886_v2 = vmov 0   ;;  %vm288_vm1 = vcmask 523264   ;;  %vm888_vm2 = vmmov 0   ;;  %s1129_s0 = inlined_call_operand.vmem [shape: f32[32,128], index: 0, kind: input, shape index: {}]   ;;  %s1130_s1 = inlined_call_operand.vmem [shape: f32[64,32], index: 1, kind: input, shape index: {}]   ;;  %s1131_s8 = inlined_call_operand.<no memory space> [shape: f32[1,1], index: 8, kind: input, shape index: {}]   ;;  %s1132_s2 = inlined_call_operand.vmem [shape: f32[64,1], index: 2, kind: input, shape index: {}]   ;;  %s1133_s4 = inlined_call_operand.vmem [shape: f32[64,1], index: 4, kind: input, shape index: {}]   ;;  %s1134_s6 = inlined_call_operand.vmem [shape: f32[64,1], index: 6, kind: input, shape index: {}]   ;;  %s1135_s3 = inlined_call_operand.vmem [shape: f32[64,64], index: 3, kind: input, shape index: {}]   ;;  %s1136_s5 = inlined_call_operand.vmem [shape: f32[64,64], index: 5, kind: input, shape index: {}]   ;;  %s1137_s7 = inlined_call_operand.vmem [shape: f32[1,64], index: 7, kind: input, shape index: {}]   ;;  %s1138_s9 = inlined_call_operand.vmem [shape: f32[1,128], index: 9, kind: output, shape index: {}]  }
   0x1   :  { %v37_v0 = vld [vmem:[%s1129_s0 + $0x18] sm:$0xff]  ;;  %v36_v1 = vld [vmem:[%s1129_s0 + $0x10] sm:$0xff]  ;;  %884 = vset.pattern.permute.xlu0 %v886_v2  ;;  %885 = vset.pattern.permute.xlu1 %v886_v2  ;;  %v14_v3 = vstv %s1131_s8  ;;  %v38_v4 = vld [vmem:[%s1130_s1] sm:$0xff] }
   0x2   :  { %786 = vmatprep.subr.mxu0 %v37_v0  ;;  %15 = vst [vmem:[#allocation2] sm:$0x1] %v14_v3  ;;  %v35_v5 = vld [vmem:[%s1129_s0 + $0x8] sm:$0xff]  ;;  %794 = vmatprep.mubr.msk.f32.mxu0 %vm94_vm0, %v38_v4  ;;  %v34_v6 = vld [vmem:[%s1129_s0] sm:$0xff]  ;;  %v53_v7 = vld [vmem:[%s1132_s2 + $0x38] sm:$0xff] }
   0x3   :  { %787 = vmatpush3.msra.mxu0 %v37_v0  ;;  %v51_v8 = vld [vmem:[%s1132_s2 + $0x28] sm:$0xff]  ;;  %91 = vperm.xlu0 %884, %v53_v7   ;;  %v52_v10 = vld [vmem:[%s1132_s2 + $0x30] sm:$0xff]  ;;  %v50_v12 = vld [vmem:[%s1132_s2 + $0x20] sm:$0xff] }
   0x4   :  { %788 = vmatprep.subr.mxu0 %v36_v1  ;;  %v39_v9 = vld [vmem:[%s1130_s1 + $0x8] sm:$0xff]  ;;  %81 = vperm.xlu1 %885, %v51_v8   ;;  %v40_v11 = vld [vmem:[%s1130_s1 + $0x10] sm:$0xff]  ;;  %v41_v13 = vld [vmem:[%s1130_s1 + $0x18] sm:$0xff] }
   0x5   :  { %789 = vmatpush3.msra.mxu0 %v36_v1  ;;  %v49_v14 = vld [vmem:[%s1132_s2 + $0x18] sm:$0xff]  ;;  %v42_v15 = vld [vmem:[%s1130_s1 + $0x20] sm:$0xff]  ;;  %v48_v16 = vld [vmem:[%s1132_s2 + $0x10] sm:$0xff] }
   0x6   :  { %790 = vmatprep.subr.mxu0 %v35_v5  ;;  %v43_v17 = vld [vmem:[%s1130_s1 + $0x28] sm:$0xff]  ;;  %v44_v19 = vld [vmem:[%s1130_s1 + $0x30] sm:$0xff]  ;;  %v46_v20 = vld [vmem:[%s1132_s2] sm:$0xff] }
   0x7   :  { %791 = vmatpush3.msra.mxu0 %v35_v5  ;;  %86 = vperm.xlu0 %884, %v52_v10   ;;  %v47_v18 = vld [vmem:[%s1132_s2 + $0x8] sm:$0xff]  ;;  %v45_v21 = vld [vmem:[%s1130_s1 + $0x38] sm:$0xff]  ;;  %v246_v23 = vld [vmem:[%s1133_s4 + $0x30] sm:$0xff] }
   0x8   :  { %792 = vmatprep.subr.mxu0 %v34_v6  ;;  %76 = vperm.xlu1 %885, %v50_v12   ;;  %v247_v22 = vld [vmem:[%s1133_s4 + $0x38] sm:$0xff]  ;;  %v245_v24 = vld [vmem:[%s1133_s4 + $0x28] sm:$0xff]  ;;  %v244_v25 = vld [vmem:[%s1133_s4 + $0x20] sm:$0xff] }
   0x9   :  { %793 = vmatpush3.msra.mxu0 %v34_v6  ;;  %v243_v26 = vld [vmem:[%s1133_s4 + $0x18] sm:$0xff]  ;;  %v242_v27 = vld [vmem:[%s1133_s4 + $0x10] sm:$0xff]  ;;  %v241_v28 = vld [vmem:[%s1133_s4 + $0x8] sm:$0xff] }
   0xa   :  { %795 = vmatmul.mubr.msk.f32.vlgmr.msra.gmra.mxu0 %vm94_vm0, %v39_v9  ;;  %v240_v29 = vld [vmem:[%s1133_s4] sm:$0xff]  ;;  %v441_v30 = vld [vmem:[%s1134_s6 + $0x38] sm:$0xff]  ;;  %v440_v31 = vld [vmem:[%s1134_s6 + $0x30] sm:$0xff] }
   0xb   :  { %797 = vmatprep.mubr.msk.f32.mxu0 %vm94_vm0, %v40_v11  ;;  %71 = vperm.xlu0 %884, %v49_v14   ;;  %v439_v32 = vld [vmem:[%s1134_s6 + $0x28] sm:$0xff]  ;;  %v438_v33 = vld [vmem:[%s1134_s6 + $0x20] sm:$0xff]  ;;  %v437_v34 = vld [vmem:[%s1134_s6 + $0x18] sm:$0xff] }
   0xc   :  { %66 = vperm.xlu1 %885, %v48_v16   ;;  %v436_v35 = vld [vmem:[%s1134_s6 + $0x10] sm:$0xff]  ;;  %v435_v36 = vld [vmem:[%s1134_s6 + $0x8] sm:$0xff]  ;;  %v434_v37 = vld [vmem:[%s1134_s6] sm:$0xff] }
   0xd   :  { %v620_v38 = vld [vmem:[#allocation2] sm:$0x1]  ;;  %v233_v8 = vld [vmem:[%s1135_s3 + $0x8] sm:$0xff]  ;;  %v234_v9 = vld [vmem:[%s1135_s3 + $0x10] sm:$0xff] }
   0xe   :  { %798 = vmatmul.mubr.msk.f32.gmra.mxu0 %vm94_vm0, %v41_v13  ;;  %v232_v39 = vld [vmem:[%s1135_s3] sm:$0xff]  ;;  %v235_v10 = vld [vmem:[%s1135_s3 + $0x18] sm:$0xff]  ;;  %v237_v12 = vld [vmem:[%s1135_s3 + $0x28] sm:$0xff] }
   0xf   :  { %800 = vmatprep.mubr.msk.f32.mxu0 %vm94_vm0, %v42_v15  ;;  %61 = vperm.xlu0 %884, %v47_v18   ;;  %v236_v11 = vld [vmem:[%s1135_s3 + $0x20] sm:$0xff]  ;;  %v238_v13 = vld [vmem:[%s1135_s3 + $0x30] sm:$0xff]  ;;  %v239_v14 = vld [vmem:[%s1135_s3 + $0x38] sm:$0xff] }
  0x10   :  { %56 = vperm.xlu1 %885, %v46_v20   ;;  %822 = vmatprep.mubr.msk.f32.mxu1 %vm288_vm1, %v232_v39  ;;  %v426_v15 = vld [vmem:[%s1136_s5] sm:$0xff] }
  0x12   :  { %801 = vmatmul.mubr.msk.f32.gmra.mxu0 %vm94_vm0, %v43_v17 }
  0x13   :  { %803 = vmatprep.mubr.msk.f32.mxu0 %vm94_vm0, %v44_v19  ;;  %285 = vperm.xlu0 %884, %v247_v22  }
  0x14   :  { %280 = vperm.xlu1 %885, %v246_v23  }
  0x16   :  { %804 = vmatmul.mubr.msk.f32.gmra.mxu0 %vm94_vm0, %v45_v21 }
  0x17   :  { %275 = vperm.xlu0 %884, %v245_v24   ;;  %850 = vmatprep.mubr.msk.f32.mxu0 %vm288_vm1, %v426_v15 }
  0x18   :  { %270 = vperm.xlu1 %885, %v244_v25  }
  0x1b   :  { %265 = vperm.xlu0 %884, %v243_v26  }
  0x1c   :  { %260 = vperm.xlu1 %885, %v242_v27  }
  0x1f   :  { %255 = vperm.xlu0 %884, %v241_v28  }
  0x20   :  { %250 = vperm.xlu1 %885, %v240_v29  }
  0x23   :  { %479 = vperm.xlu0 %884, %v441_v30  }
  0x24   :  { %474 = vperm.xlu1 %885, %v440_v31  }
  0x27   :  { %469 = vperm.xlu0 %884, %v439_v32  }
  0x28   :  { %464 = vperm.xlu1 %885, %v438_v33  }
  0x2b   :  { %459 = vperm.xlu0 %884, %v437_v34  }
  0x2c   :  { %454 = vperm.xlu1 %885, %v436_v35  }
  0x2f   :  { %449 = vperm.xlu0 %884, %v435_v36  }
  0x30   :  { %444 = vperm.xlu1 %885, %v434_v37  }
  0x33   :  { %623 = vperm.xlu0 %884, %v620_v38  }
  0x7e   :  { %v92_v42 = vpop.permute.xlu0 %91 }
  0x7f   :  { %v82_v44 = vpop.permute.xlu1 %81 }
  0x82   :  { %v87_v47 = vpop.permute.xlu0 %86 }
  0x83   :  { %v77_v49 = vpop.permute.xlu1 %76 }
  0x86   :  { %v72_v56 = vpop.permute.xlu0 %71 }
  0x87   :  { %v67_v59 = vpop.permute.xlu1 %66 }
  0x8a   :  { %v62_v0 = vpop.permute.xlu0 %61 }
  0x8b   :  { %v57_v3 = vpop.permute.xlu1 %56 }
  0x8e   :  { %v286_v18 = vpop.permute.xlu0 %285 }
  0x8f   :  { %v281_v20 = vpop.permute.xlu1 %280 }
  0x92   :  { %v276_v23 = vpop.permute.xlu0 %275 }
  0x93   :  { %v271_v25 = vpop.permute.xlu1 %270 }
  0x96   :  { %v266_v32 = vpop.permute.xlu0 %265 }
  0x97   :  { %v261_v35 = vpop.permute.xlu1 %260 }
  0xca   :  { %v796_v40 = vpop.f32.mrf.mxu0 }
  0xcb   :  { %v191_v1 = vadd.f32 %v796_v40, %v62_v0  ;;  %v256_v40 = vpop.permute.xlu0 %255 }
  0xcc   :  { %v185_v41 = vpop.f32.mrf.mxu0 }
  0xcd   :  { %v186_v4 = vadd.f32 %v185_v41, %v57_v3  ;;  %v225_v6 = vmax.f32 %v191_v1, 0.0 }
  0xce   :  { %v799_v43 = vpop.f32.mrf.mxu0 }
  0xcf   :  { %v201_v60 = vadd.f32 %v799_v43, %v72_v56  ;;  %v224_v7 = vmax.f32 %v186_v4, 0.0  ;;  %v251_v43 = vpop.permute.xlu1 %250 }
  0xd0   :  { %v195_v45 = vpop.f32.mrf.mxu0 }
  0xd1   :  { %v196_v62 = vadd.f32 %v195_v45, %v67_v59  ;;  %v227_v2 = vmax.f32 %v201_v60, 0.0 }
  0xd2   :  { %v802_v46 = vpop.f32.mrf.mxu0 }
  0xd3   :  { %v211_v53 = vadd.f32 %v802_v46, %v82_v44  ;;  %v226_v5 = vmax.f32 %v196_v62, 0.0  ;;  %v475_v60 = vpop.permute.xlu1 %474 }
  0xd4   :  { %v205_v48 = vpop.f32.mrf.mxu0 }
  0xd5   :  { %v206_v57 = vadd.f32 %v205_v48, %v77_v49  ;;  %v229_v61 = vmax.f32 %v211_v53, 0.0  ;;  %v427_v48 = vld [vmem:[%s1136_s5 + $0x8] sm:$0xff]  ;;  %v428_v49 = vld [vmem:[%s1136_s5 + $0x10] sm:$0xff] }
  0xd6   :  { %v805_v50 = vpop.f32.mrf.mxu0  ;;  %v432_v53 = vld [vmem:[%s1136_s5 + $0x30] sm:$0xff] }
  0xd7   :  { %v221_v51 = vadd.f32 %v805_v50, %v92_v42  ;;  %v228_v63 = vmax.f32 %v206_v57, 0.0  ;;  %v429_v50 = vld [vmem:[%s1136_s5 + $0x18] sm:$0xff]  ;;  %v465_v1 = vpop.permute.xlu1 %464 }
  0xd8   :  { %v215_v52 = vpop.f32.mrf.mxu0 }
  0xd9   :  { %v231_v54 = vmax.f32 %v221_v51, 0.0  ;;  %v216_v55 = vadd.f32 %v215_v52, %v87_v47  ;;  %v430_v51 = vld [vmem:[%s1136_s5 + $0x20] sm:$0xff]  ;;  %v431_v52 = vld [vmem:[%s1136_s5 + $0x28] sm:$0xff] }
  0xdb   :  { %v230_v58 = vmax.f32 %v216_v55, 0.0  ;;  %806 = vmatprep.subr.mxu1 %v231_v54  ;;  %v887_v55 = vmov 0.0  }
  0xdc   :  { %807 = vmatpush3.msra.mxu1 %v231_v54  ;;  %v433_v54 = vld [vmem:[%s1136_s5 + $0x38] sm:$0xff] }
  0xdd   :  { %808 = vmatprep.subr.mxu1 %v230_v58 }
  0xde   :  { %809 = vmatpush3.msra.mxu1 %v230_v58  ;;  %v480_v58 = vpop.permute.xlu0 %479 }
  0xdf   :  { %810 = vmatprep.subr.mxu1 %v229_v61 }
  0xe0   :  { %811 = vmatpush3.msra.mxu1 %v229_v61 }
  0xe1   :  { %812 = vmatprep.subr.mxu1 %v228_v63 }
  0xe2   :  { %813 = vmatpush3.msra.mxu1 %v228_v63  ;;  %v470_v63 = vpop.permute.xlu0 %469 }
  0xe3   :  { %814 = vmatprep.subr.mxu1 %v227_v2 }
  0xe4   :  { %815 = vmatpush3.msra.mxu1 %v227_v2 }
  0xe5   :  { %816 = vmatprep.subr.mxu1 %v226_v5 }
  0xe6   :  { %817 = vmatpush3.msra.mxu1 %v226_v5 }
  0xe7   :  { %818 = vmatprep.subr.mxu1 %v225_v6 }
  0xe8   :  { %819 = vmatpush3.msra.mxu1 %v225_v6 }
  0xe9   :  { %820 = vmatprep.subr.mxu1 %v224_v7 }
  0xea   :  { %821 = vmatpush3.msra.mxu1 %v224_v7 }
  0xeb   :  { %823 = vmatmul.mubr.msk.f32.vlgmr.msra.gmra.mxu1 %vm288_vm1, %v233_v8  ;;  %862 = vmatprep.subr.mxu1 %v887_v55  ;;  %v460_v8 = vpop.permute.xlu0 %459 }
  0xec   :  { %825 = vmatprep.mubr.msk.f32.mxu1 %vm288_vm1, %v234_v9 }
  0xef   :  { %826 = vmatmul.mubr.msk.f32.gmra.mxu1 %vm288_vm1, %v235_v10 }
  0xf0   :  { %828 = vmatprep.mubr.msk.f32.mxu1 %vm288_vm1, %v236_v11  ;;  %v455_v11 = vpop.permute.xlu1 %454 }
  0xf3   :  { %829 = vmatmul.mubr.msk.f32.gmra.mxu1 %vm288_vm1, %v237_v12 }
  0xf4   :  { %831 = vmatprep.mubr.msk.f32.mxu1 %vm288_vm1, %v238_v13 }
  0xf7   :  { %832 = vmatmul.mubr.msk.f32.gmra.mxu1 %vm288_vm1, %v239_v14 }
  0xf8   :  { %878 = vmatprep.mubr.msk.f32.mxu1 %vm888_vm2, %v887_v55 }
 0x1ab   :  { %v824_v16 = vpop.f32.mrf.mxu1 }
 0x1ac   :  { %v385_v41 = vadd.f32 %v824_v16, %v256_v40  ;;  %v450_v16 = vpop.permute.xlu0 %449 }
 0x1ad   :  { %v379_v17 = vpop.f32.mrf.mxu1 }
 0x1ae   :  { %v380_v44 = vadd.f32 %v379_v17, %v251_v43  ;;  %v419_v46 = vmax.f32 %v385_v41, 0.0 }
 0x1af   :  { %v827_v19 = vpop.f32.mrf.mxu1 }
 0x1b0   :  { %v395_v36 = vadd.f32 %v827_v19, %v266_v32  ;;  %v418_v47 = vmax.f32 %v380_v44, 0.0  ;;  %v445_v19 = vpop.permute.xlu1 %444 }
 0x1b1   :  { %v389_v21 = vpop.f32.mrf.mxu1 }
 0x1b2   :  { %v390_v38 = vadd.f32 %v389_v21, %v261_v35  ;;  %v421_v42 = vmax.f32 %v395_v36, 0.0 }
 0x1b3   :  { %v830_v22 = vpop.f32.mrf.mxu1 }
 0x1b4   :  { %v405_v29 = vadd.f32 %v830_v22, %v276_v23  ;;  %v420_v45 = vmax.f32 %v390_v38, 0.0 }
 0x1b5   :  { %v399_v24 = vpop.f32.mrf.mxu1 }
 0x1b6   :  { %v400_v33 = vadd.f32 %v399_v24, %v271_v25  ;;  %v423_v37 = vmax.f32 %v405_v29, 0.0  ;;  %v619_v24 = vld [vmem:[%s1137_s7] sm:$0x1]  ;;  %v626_v25 = vlaneseq }
 0x1b7   :  { %v833_v26 = vpop.f32.mrf.mxu1 }
 0x1b8   :  { %v415_v27 = vadd.f32 %v833_v26, %v286_v18  ;;  %v422_v39 = vmax.f32 %v400_v33, 0.0  ;;  %v627_v26 = vshrl.u32 %v626_v25, 7 }
 0x1b9   :  { %v409_v28 = vpop.f32.mrf.mxu1 }
 0x1ba   :  { %v425_v30 = vmax.f32 %v415_v27, 0.0  ;;  %v410_v31 = vadd.f32 %v409_v28, %v281_v20  ;;  %v628_v27 = vsub.s32 0, %v627_v26  ;;  %v624_v28 = vpop.permute.xlu0 %623 }
 0x1bc   :  { %v424_v34 = vmax.f32 %v410_v31, 0.0  ;;  %834 = vmatprep.subr.mxu0 %v425_v30  ;;  %v629_v29 = vrot.slane %v624_v28, %v628_v27 }
 0x1bd   :  { %835 = vmatpush3.msra.mxu0 %v425_v30 }
 0x1be   :  { %836 = vmatprep.subr.mxu0 %v424_v34 }
 0x1bf   :  { %837 = vmatpush3.msra.mxu0 %v424_v34 }
 0x1c0   :  { %838 = vmatprep.subr.mxu0 %v423_v37 }
 0x1c1   :  { %839 = vmatpush3.msra.mxu0 %v423_v37 }
 0x1c2   :  { %840 = vmatprep.subr.mxu0 %v422_v39 }
 0x1c3   :  { %841 = vmatpush3.msra.mxu0 %v422_v39 }
 0x1c4   :  { %842 = vmatprep.subr.mxu0 %v421_v42 }
 0x1c5   :  { %843 = vmatpush3.msra.mxu0 %v421_v42 }
 0x1c6   :  { %844 = vmatprep.subr.mxu0 %v420_v45 }
 0x1c7   :  { %845 = vmatpush3.msra.mxu0 %v420_v45 }
 0x1c8   :  { %846 = vmatprep.subr.mxu0 %v419_v46 }
 0x1c9   :  { %847 = vmatpush3.msra.mxu0 %v419_v46 }
 0x1ca   :  { %848 = vmatprep.subr.mxu0 %v418_v47 }
 0x1cb   :  { %849 = vmatpush3.msra.mxu0 %v418_v47 }
 0x1cc   :  { %851 = vmatmul.mubr.msk.f32.vlgmr.msra.gmra.mxu0 %vm288_vm1, %v427_v48 }
 0x1cd   :  { %853 = vmatprep.mubr.msk.f32.mxu0 %vm288_vm1, %v428_v49 }
 0x1d0   :  { %854 = vmatmul.mubr.msk.f32.gmra.mxu0 %vm288_vm1, %v429_v50 }
 0x1d1   :  { %856 = vmatprep.mubr.msk.f32.mxu0 %vm288_vm1, %v430_v51 }
 0x1d4   :  { %857 = vmatmul.mubr.msk.f32.gmra.mxu0 %vm288_vm1, %v431_v52 }
 0x1d5   :  { %859 = vmatprep.mubr.msk.f32.mxu0 %vm288_vm1, %v432_v53 }
 0x1d8   :  { %860 = vmatmul.mubr.msk.f32.gmra.mxu0 %vm288_vm1, %v433_v54 }
 0x28c   :  { %v852_v56 = vpop.f32.mrf.mxu0 }
 0x28d   :  { %v578_v17 = vadd.f32 %v852_v56, %v450_v16 }
 0x28e   :  { %v572_v57 = vpop.f32.mrf.mxu0 }
 0x28f   :  { %v573_v20 = vadd.f32 %v572_v57, %v445_v19  ;;  %v612_v22 = vmax.f32 %v578_v17, 0.0 }
 0x290   :  { %v855_v59 = vpop.f32.mrf.mxu0 }
 0x291   :  { %v588_v12 = vadd.f32 %v855_v59, %v460_v8  ;;  %v611_v23 = vmax.f32 %v573_v20, 0.0 }
 0x292   :  { %v582_v61 = vpop.f32.mrf.mxu0 }
 0x293   :  { %v583_v14 = vadd.f32 %v582_v61, %v455_v11  ;;  %v614_v18 = vmax.f32 %v588_v12, 0.0 }
 0x294   :  { %v858_v62 = vpop.f32.mrf.mxu0 }
 0x295   :  { %v598_v5 = vadd.f32 %v858_v62, %v470_v63  ;;  %v613_v21 = vmax.f32 %v583_v14, 0.0 }
 0x296   :  { %v592_v0 = vpop.f32.mrf.mxu0 }
 0x297   :  { %v593_v9 = vadd.f32 %v592_v0, %v465_v1  ;;  %v616_v13 = vmax.f32 %v598_v5, 0.0 }
 0x298   :  { %v861_v2 = vpop.f32.mrf.mxu0 }
 0x299   :  { %v608_v3 = vadd.f32 %v861_v2, %v480_v58  ;;  %v615_v15 = vmax.f32 %v593_v9, 0.0 }
 0x29a   :  { %v602_v4 = vpop.f32.mrf.mxu0 }
 0x29b   :  { %v618_v6 = vmax.f32 %v608_v3, 0.0  ;;  %v603_v7 = vadd.f32 %v602_v4, %v475_v60 }
 0x29d   :  { %v617_v10 = vmax.f32 %v603_v7, 0.0  ;;  %863 = vmatpush3.msra.mxu1 %v618_v6 }
 0x29e   :  { %864 = vmatprep.subr.mxu1 %v887_v55 }
 0x29f   :  { %865 = vmatpush3.msra.mxu1 %v617_v10 }
 0x2a0   :  { %866 = vmatprep.subr.mxu1 %v887_v55 }
 0x2a1   :  { %867 = vmatpush3.msra.mxu1 %v616_v13 }
 0x2a2   :  { %868 = vmatprep.subr.mxu1 %v887_v55 }
 0x2a3   :  { %869 = vmatpush3.msra.mxu1 %v615_v15 }
 0x2a4   :  { %870 = vmatprep.subr.mxu1 %v887_v55 }
 0x2a5   :  { %871 = vmatpush3.msra.mxu1 %v614_v18 }
 0x2a6   :  { %872 = vmatprep.subr.mxu1 %v887_v55 }
 0x2a7   :  { %873 = vmatpush3.msra.mxu1 %v613_v21 }
 0x2a8   :  { %874 = vmatprep.subr.mxu1 %v887_v55 }
 0x2a9   :  { %875 = vmatpush3.msra.mxu1 %v612_v22 }
 0x2aa   :  { %876 = vmatprep.subr.mxu1 %v887_v55 }
 0x2ab   :  { %877 = vmatpush3.msra.mxu1 %v611_v23 }
 0x2ac   :  { %879 = vmatmul.mubr.msk.f32.vlgmr.msra.gmra.mxu1 %vm288_vm1, %v619_v24 }
 0x36c   :  { %v699_v30 = vpop.f32.mrf.mxu1 }
 0x36d   :  { %v700_v31 = vadd.f32 %v699_v30, %v629_v29 }
 0x36e   :  { %v880_v32 = vpop.f32.mrf.mxu1 }
 0x36f   :  { %703 = vst [vmem:[%s1138_s9] sm:$0x1] %v700_v31 }

</bundles_post_ra>
